<compile_context>
chip_gen: v6e
topology: v6e:2x2x1
jax: 0.10.0
libtpu: 0.0.40
codegen_flags: <defaults>
</compile_context>

<pallas_src>
import jax
import jax.numpy as jnp
from jax import lax
from jax.experimental import pallas as pl
from jax.experimental.pallas import tpu as pltpu


def _round_up(n, m):
    return ((n + m - 1) // m) * m


def discriminator_kernel(x_ref, w1_ref, b1_ref, w2_ref, b2_ref, w3_ref, b3_ref,
                         out_ref, acc_ref):
    k = pl.program_id(1)

    # --- Layer 1 partial matmul, accumulated over the K grid axis (MXU, bf16 in,
    # f32 accumulate). Zero the accumulator at the first K step.
    @pl.when(k == 0)
    def _():
        acc_ref[...] = jnp.zeros_like(acc_ref)

    acc_ref[...] += jnp.dot(x_ref[...], w1_ref[...],
                            preferred_element_type=jnp.float32)

    # --- Finalize: bias + LeakyReLU + layers 2 and 3, only once per batch tile.
    @pl.when(k == pl.num_programs(1) - 1)
    def _():
        h1 = acc_ref[...] + b1_ref[...]                        # (TB, 512) f32
        h1 = jnp.where(h1 > 0, h1, 0.2 * h1)

        # Layer 2 (MXU, bf16 in, f32 accumulate)
        h2 = jnp.dot(h1.astype(w2_ref.dtype), w2_ref[...],
                     preferred_element_type=jnp.float32)
        h2 = h2 + b2_ref[...]                                  # (TB, 256) f32
        h2 = jnp.where(h2 > 0, h2, 0.2 * h2)

        # Layer 3 (256 -> 1): VPU multiply + XLU lane reduction instead of an
        # MXU pass that would use a single output column.
        out = jnp.sum(h2 * w3_ref[...], axis=-1, keepdims=True) + b3_ref[...]
        out_ref[...] = out.astype(out_ref.dtype)               # (TB, 1)


def discriminator_forward(img, params):
    """img: (B, C, H, W) float32; params: dict of w1,b1,w2,b2,w3,b3 (w: (in,out))."""
    B = img.shape[0]
    x = img.reshape(B, -1).astype(jnp.float32)                 # matches torch .view
    D = x.shape[1]

    w1, b1 = params["w1"], params["b1"]
    w2, b2 = params["w2"], params["b2"]
    w3, b3 = params["w3"], params["b3"]

    # ---- K tiling / padding of the feature dim (aligned to 128, K-tile <= 512).
    TK = 512 if D > 512 else _round_up(D, 128)
    Dp = _round_up(D, TK)
    if Dp != D:
        x = jnp.pad(x, ((0, 0), (0, Dp - D)))
        w1 = jnp.pad(w1, ((0, Dp - D), (0, 0)))                # zero rows: no effect

    # ---- Batch tiling / padding.
    TB = min(256, _round_up(B, 8))
    Bp = _round_up(B, TB)
    if Bp != B:
        x = jnp.pad(x, ((0, Bp - B), (0, 0)))

    # ---- dtype plumbing: bf16 weights/activations, f32 biases / final layer.
    x_bf = x.astype(jnp.bfloat16)
    w1_bf = w1.astype(jnp.bfloat16)
    w2_bf = w2.astype(jnp.bfloat16)
    w3_row = w3.reshape(1, -1).astype(jnp.float32)             # (1, 256)
    b1_f = b1.astype(jnp.float32)                              # (1, 512)
    b2_f = b2.astype(jnp.float32)                              # (1, 256)
    b3_f = b3.reshape(1, 1).astype(jnp.float32)                # (1, 1)

    grid = (Bp // TB, Dp // TK)

    # Weight/bias BlockSpecs return a constant block index so they stay resident
    # in VMEM across all grid steps (no re-DMA); x/out are tiled over the batch.
    in_specs = [
        pl.BlockSpec((TB, TK), lambda i, k: (i, k)),           # x
        pl.BlockSpec((TK, 512), lambda i, k: (k, 0)),          # w1 (K-tiled)
        pl.BlockSpec((1, 512), lambda i, k: (0, 0)),           # b1
        pl.BlockSpec((512, 256), lambda i, k: (0, 0)),         # w2
        pl.BlockSpec((1, 256), lambda i, k: (0, 0)),           # b2
        pl.BlockSpec((1, 256), lambda i, k: (0, 0)),           # w3 (row form)
        pl.BlockSpec((1, 1), lambda i, k: (0, 0)),             # b3
    ]
    out_spec = pl.BlockSpec((TB, 1), lambda i, k: (i, 0))

    flops = 2 * Bp * (Dp * 512 + 512 * 256 + 256 * 1)
    bytes_accessed = (x_bf.size * 2 + w1_bf.size * 2 + w2_bf.size * 2
                      + (b1_f.size + b2_f.size + w3_row.size + b3_f.size) * 4
                      + Bp * 1 * 4)

    out = pl.pallas_call(
        discriminator_kernel,
        out_shape=jax.ShapeDtypeStruct((Bp, 1), jnp.float32),
        grid=grid,
        in_specs=in_specs,
        out_specs=out_spec,
        scratch_shapes=[pltpu.VMEM((TB, 512), jnp.float32)],   # layer-1 accumulator
        compiler_params=pltpu.CompilerParams(
            dimension_semantics=("parallel", "arbitrary")),
        cost_estimate=pl.CostEstimate(flops=flops, transcendentals=0,
                                      bytes_accessed=bytes_accessed),
    )(x_bf, w1_bf, b1_f, w2_bf, b2_f, w3_row, b3_f)

    return out[:B]


def init_params(key, in_features):
    """Deterministic init mimicking torch.nn.Linear (uniform +-1/sqrt(fan_in)).
    Weights stored as (in, out) for x @ W."""
    dims = [(in_features, 512), (512, 256), (256, 1)]
    params = {}
    keys = jax.random.split(key, 2 * len(dims))
    for i, (fin, fout) in enumerate(dims):
        bound = 1.0 / (fin ** 0.5)
        params[f"w{i+1}"] = jax.random.uniform(
            keys[2 * i], (fin, fout), jnp.float32, -bound, bound)
        params[f"b{i+1}"] = jax.random.uniform(
            keys[2 * i + 1], (1, fout), jnp.float32, -bound, bound)
    return params


def reference_forward(img, params, *, bf16_matched=True):
    """Plain-JAX reference. With bf16_matched=True it rounds the MXU operands to
    bf16 exactly like the kernel does (f32 accumulation), so it isolates kernel
    plumbing errors from the deliberate bf16 precision change."""
    prec = lax.Precision.HIGHEST
    x = img.reshape(img.shape[0], -1).astype(jnp.float32)
    w1, w2 = params["w1"], params["w2"]
    if bf16_matched:
        x = x.astype(jnp.bfloat16).astype(jnp.float32)
        w1 = w1.astype(jnp.bfloat16).astype(jnp.float32)
        w2 = w2.astype(jnp.bfloat16).astype(jnp.float32)
    h1 = jnp.dot(x, w1, precision=prec) + params["b1"]
    h1 = jnp.where(h1 > 0, h1, 0.2 * h1)
    if bf16_matched:
        h1 = h1.astype(jnp.bfloat16).astype(jnp.float32)
    h2 = jnp.dot(h1, w2, precision=prec) + params["b2"]
    h2 = jnp.where(h2 > 0, h2, 0.2 * h2)
    return jnp.dot(h2, params["w3"], precision=prec) + params["b3"]


if __name__ == "__main__":
    key = jax.random.PRNGKey(0)
    k_img, k_par = jax.random.split(key)

    # Small shapes consistent with the module: img_shape = (C, H, W)
    B, C, H, W = 8, 4, 16, 16
    img = jax.random.normal(k_img, (B, C, H, W), dtype=jnp.float32)
    params = init_params(k_par, C * H * W)

    validity = discriminator_forward(img, params)
    validity = jax.block_until_ready(validity)

    ref = reference_forward(img, params, bf16_matched=True)
    assert validity.shape == (B, 1)
    assert jnp.allclose(validity, ref, atol=1e-3, rtol=1e-3), (
        float(jnp.max(jnp.abs(validity - ref))))

    print("KERNEL_OK")
</pallas_src>

<mosaic_0001>
module attributes {stable_mosaic.version = 11 : i64} {
  func.func @discriminator_kernel(%arg0: i32, %arg1: i32, %arg2: memref<8x512xbf16, #tpu.memory_space<vmem>>, %arg3: memref<512x512xbf16, #tpu.memory_space<vmem>>, %arg4: memref<1x512xf32, #tpu.memory_space<vmem>>, %arg5: memref<512x256xbf16, #tpu.memory_space<vmem>>, %arg6: memref<1x256xf32, #tpu.memory_space<vmem>>, %arg7: memref<1x256xf32, #tpu.memory_space<vmem>>, %arg8: memref<1x1xf32, #tpu.memory_space<vmem>>, %arg9: memref<8x1xf32, #tpu.memory_space<vmem>>, %arg10: memref<8x512xf32, #tpu.memory_space<vmem>>) attributes {dimension_semantics = [#tpu.dimension_semantics<parallel>, #tpu.dimension_semantics<arbitrary>], iteration_bounds = array<i64: 1, 2>, scalar_prefetch = 0 : i64, scratch_operands = 1 : i64, tpu.core_type = #tpu.core_type<tc>, window_params = [{transform_indices = @transform_0, window_bounds = array<i64: 8, 512>}, {transform_indices = @transform_1, window_bounds = array<i64: 512, 512>}, {pipeline_mode = #tpu.pipeline_mode<synchronous>, transform_indices = @transform_2, window_bounds = array<i64: 1, 512>}, {pipeline_mode = #tpu.pipeline_mode<synchronous>, transform_indices = @transform_3, window_bounds = array<i64: 512, 256>}, {pipeline_mode = #tpu.pipeline_mode<synchronous>, transform_indices = @transform_4, window_bounds = array<i64: 1, 256>}, {pipeline_mode = #tpu.pipeline_mode<synchronous>, transform_indices = @transform_5, window_bounds = array<i64: 1, 256>}, {pipeline_mode = #tpu.pipeline_mode<synchronous>, transform_indices = @transform_6, window_bounds = array<i64: 1, 1>}, {transform_indices = @transform_7, window_bounds = array<i64: 8, 1>}]} {
    %c0_i32 = arith.constant 0 : i32
    %0 = arith.cmpi eq, %arg1, %c0_i32 : i32
    %1 = arith.extui %0 : i1 to i32
    %c0_i32_0 = arith.constant 0 : i32
    %2 = arith.cmpi ne, %1, %c0_i32_0 : i32
    scf.if %2 {
      %cst_9 = arith.constant 0.000000e+00 : f32
      %12 = vector.broadcast %cst_9 : f32 to vector<8x512xf32>
      %c0_10 = arith.constant 0 : index
      %c0_11 = arith.constant 0 : index
      %13 = vector.load %arg10[%c0_10, %c0_11] : memref<8x512xf32, #tpu.memory_space<vmem>>, vector<8x512xf32>
      tpu.vector_store %arg10[%c0_10, %c0_11], %12 {strides = array<i32>} : memref<8x512xf32, #tpu.memory_space<vmem>>, vector<8x512xf32>,
    } else {
    }
    %c0 = arith.constant 0 : index
    %c0_1 = arith.constant 0 : index
    %3 = vector.load %arg10[%c0, %c0_1] : memref<8x512xf32, #tpu.memory_space<vmem>>, vector<8x512xf32>
    %c0_2 = arith.constant 0 : index
    %c0_3 = arith.constant 0 : index
    %4 = vector.load %arg2[%c0_2, %c0_3] : memref<8x512xbf16, #tpu.memory_space<vmem>>, vector<8x512xbf16>
    %c0_4 = arith.constant 0 : index
    %c0_5 = arith.constant 0 : index
    %5 = vector.load %arg3[%c0_4, %c0_5] : memref<512x512xbf16, #tpu.memory_space<vmem>>, vector<512x512xbf16>
    %cst = arith.constant dense<0.000000e+00> : vector<8x512xf32>
    %6 = tpu.matmul %4, %5, %cst {dimension_numbers = #tpu.dot_dimension_numbers<[1], [0], [0], [1], [0, 0, 1, 1], [], []>} : vector<8x512xbf16>, vector<512x512xbf16>, vector<8x512xf32> -> vector<8x512xf32>
    %7 = arith.addf %3, %6 : vector<8x512xf32>
    %c0_6 = arith.constant 0 : index
    %c0_7 = arith.constant 0 : index
    %8 = vector.load %arg10[%c0_6, %c0_7] : memref<8x512xf32, #tpu.memory_space<vmem>>, vector<8x512xf32>
    tpu.vector_store %arg10[%c0_6, %c0_7], %7 {strides = array<i32>} : memref<8x512xf32, #tpu.memory_space<vmem>>, vector<8x512xf32>,
    %c1_i32 = arith.constant 1 : i32
    %9 = arith.cmpi eq, %arg1, %c1_i32 : i32
    %10 = arith.extui %9 : i1 to i32
    %c0_i32_8 = arith.constant 0 : i32
    %11 = arith.cmpi ne, %10, %c0_i32_8 : i32
    scf.if %11 {
      %c0_9 = arith.constant 0 : index
      %c0_10 = arith.constant 0 : index
      %12 = vector.load %arg10[%c0_9, %c0_10] : memref<8x512xf32, #tpu.memory_space<vmem>>, vector<8x512xf32>
      %c0_11 = arith.constant 0 : index
      %c0_12 = arith.constant 0 : index
      %13 = vector.load %arg4[%c0_11, %c0_12] : memref<1x512xf32, #tpu.memory_space<vmem>>, vector<1x512xf32>
      %14 = vector.broadcast %13 : vector<1x512xf32> to vector<8x512xf32>
      %15 = arith.addf %12, %14 : vector<8x512xf32>
      %cst_13 = arith.constant 0.000000e+00 : f32
      %16 = vector.broadcast %cst_13 : f32 to vector<8x512xf32>
      %17 = arith.cmpf ogt, %15, %16 : vector<8x512xf32>
      %cst_14 = arith.constant 2.000000e-01 : f32
      %18 = vector.broadcast %cst_14 : f32 to vector<8x512xf32>
      %19 = arith.mulf %18, %15 : vector<8x512xf32>
      %20 = arith.select %17, %15, %19 : vector<8x512xi1>, vector<8x512xf32>
      %21 = arith.truncf %20 : vector<8x512xf32> to vector<8x512xbf16>
      %c0_15 = arith.constant 0 : index
      %c0_16 = arith.constant 0 : index
      %22 = vector.load %arg5[%c0_15, %c0_16] : memref<512x256xbf16, #tpu.memory_space<vmem>>, vector<512x256xbf16>
      %cst_17 = arith.constant dense<0.000000e+00> : vector<8x256xf32>
      %23 = tpu.matmul %21, %22, %cst_17 {dimension_numbers = #tpu.dot_dimension_numbers<[1], [0], [0], [1], [0, 0, 1, 1], [], []>} : vector<8x512xbf16>, vector<512x256xbf16>, vector<8x256xf32> -> vector<8x256xf32>
      %c0_18 = arith.constant 0 : index
      %c0_19 = arith.constant 0 : index
      %24 = vector.load %arg6[%c0_18, %c0_19] : memref<1x256xf32, #tpu.memory_space<vmem>>, vector<1x256xf32>
      %25 = vector.broadcast %24 : vector<1x256xf32> to vector<8x256xf32>
      %26 = arith.addf %23, %25 : vector<8x256xf32>
      %cst_20 = arith.constant 0.000000e+00 : f32
      %27 = vector.broadcast %cst_20 : f32 to vector<8x256xf32>
      %28 = arith.cmpf ogt, %26, %27 : vector<8x256xf32>
      %cst_21 = arith.constant 2.000000e-01 : f32
      %29 = vector.broadcast %cst_21 : f32 to vector<8x256xf32>
      %30 = arith.mulf %29, %26 : vector<8x256xf32>
      %31 = arith.select %28, %26, %30 : vector<8x256xi1>, vector<8x256xf32>
      %c0_22 = arith.constant 0 : index
      %c0_23 = arith.constant 0 : index
      %32 = vector.load %arg7[%c0_22, %c0_23] : memref<1x256xf32, #tpu.memory_space<vmem>>, vector<1x256xf32>
      %33 = vector.broadcast %32 : vector<1x256xf32> to vector<8x256xf32>
      %34 = arith.mulf %31, %33 : vector<8x256xf32>
      %cst_24 = arith.constant dense<0.000000e+00> : vector<8xf32>
      %35 = vector.multi_reduction <add>, %34, %cst_24 [1] : vector<8x256xf32> to vector<8xf32>
      %36 = vector.shape_cast %35 : vector<8xf32> to vector<8x1xf32>
      %c0_25 = arith.constant 0 : index
      %c0_26 = arith.constant 0 : index
      %37 = vector.load %arg8[%c0_25, %c0_26] : memref<1x1xf32, #tpu.memory_space<vmem>>, vector<1x1xf32>
      %38 = vector.broadcast %37 : vector<1x1xf32> to vector<8x1xf32>
      %39 = arith.addf %36, %38 : vector<8x1xf32>
      %c0_27 = arith.constant 0 : index
      %c0_28 = arith.constant 0 : index
      %40 = vector.load %arg9[%c0_27, %c0_28] : memref<8x1xf32, #tpu.memory_space<vmem>>, vector<8x1xf32>
      tpu.vector_store %arg9[%c0_27, %c0_28], %39 {strides = array<i32>} : memref<8x1xf32, #tpu.memory_space<vmem>>, vector<8x1xf32>,
    } else {
    }
    return
  }
  func.func @transform_0(%arg0: i32, %arg1: i32) -> (i32, i32) {
    %c0_i32 = arith.constant 0 : i32
    return %arg0, %arg1 : i32, i32
  }
  func.func @transform_1(%arg0: i32, %arg1: i32) -> (i32, i32) {
    %c0_i32 = arith.constant 0 : i32
    %c0_i32_0 = arith.constant 0 : i32
    return %arg1, %c0_i32 : i32, i32
  }
  func.func @transform_2(%arg0: i32, %arg1: i32) -> (i32, i32) {
    %c0_i32 = arith.constant 0 : i32
    %c0_i32_0 = arith.constant 0 : i32
    %c0_i32_1 = arith.constant 0 : i32
    return %c0_i32, %c0_i32_0 : i32, i32
  }
  func.func @transform_3(%arg0: i32, %arg1: i32) -> (i32, i32) {
    %c0_i32 = arith.constant 0 : i32
    %c0_i32_0 = arith.constant 0 : i32
    %c0_i32_1 = arith.constant 0 : i32
    return %c0_i32, %c0_i32_0 : i32, i32
  }
  func.func @transform_4(%arg0: i32, %arg1: i32) -> (i32, i32) {
    %c0_i32 = arith.constant 0 : i32
    %c0_i32_0 = arith.constant 0 : i32
    %c0_i32_1 = arith.constant 0 : i32
    return %c0_i32, %c0_i32_0 : i32, i32
  }
  func.func @transform_5(%arg0: i32, %arg1: i32) -> (i32, i32) {
    %c0_i32 = arith.constant 0 : i32
    %c0_i32_0 = arith.constant 0 : i32
    %c0_i32_1 = arith.constant 0 : i32
    return %c0_i32, %c0_i32_0 : i32, i32
  }
  func.func @transform_6(%arg0: i32, %arg1: i32) -> (i32, i32) {
    %c0_i32 = arith.constant 0 : i32
    %c0_i32_0 = arith.constant 0 : i32
    %c0_i32_1 = arith.constant 0 : i32
    return %c0_i32, %c0_i32_0 : i32, i32
  }
  func.func @transform_7(%arg0: i32, %arg1: i32) -> (i32, i32) {
    %c0_i32 = arith.constant 0 : i32
    %c0_i32_0 = arith.constant 0 : i32
    return %arg0, %c0_i32 : i32, i32
  }
}

</mosaic_0001>

<bundles_post_ra>
// kernel: tpu_custom_call.1
= control target key start
LH: loop header
LB: loop body
LE: loop exit
PB: predicated region body
PF: predicated region fallthrough
CT: control target
= control target key end

     0   :  { %s3092_s0 = inlined_call_operand.hbm [shape: bf16[8,1024], index: 0, kind: input, shape index: {}]   ;;  %s3093_s1 = inlined_call_operand.hbm [shape: bf16[1024,512], index: 1, kind: input, shape index: {}]   ;;  %s3094_s2 = inlined_call_operand.vmem [shape: f32[1,512], index: 2, kind: input, shape index: {}]   ;;  %s3095_s3 = inlined_call_operand.hbm [shape: bf16[512,256], index: 3, kind: input, shape index: {}]   ;;  %s3096_s4 = inlined_call_operand.vmem [shape: f32[1,256], index: 4, kind: input, shape index: {}]   ;;  %s3097_s5 = inlined_call_operand.vmem [shape: f32[1,256], index: 5, kind: input, shape index: {}]   ;;  %s3098_s6 = inlined_call_operand.<no memory space> [shape: f32[1,1], index: 6, kind: input, shape index: {}]   ;;  %s3099_s7 = inlined_call_operand.vmem [shape: f32[8,1], index: 7, kind: output, shape index: {}]  }
   0x1   :  { %3101 = sst [smem:[#allocation12_spill]] %s3092_s0  ;;  %v12_v0 = vstv %s3098_s6 }
   0x2   :  { %3102 = sst [smem:[#allocation13_spill]] %s3095_s3  ;;  %13 = vst [vmem:[#allocation3] sm:$0x1] %v12_v0 }
   0x3   :  { %14 = vsyncpa [#allocation5], 0 }
   0x4   :  { %16 = vsyncpa [#allocation5 + $0x1], 0 }
   0x5   :  { %17 = vsyncpa [#allocation7], 0 }
   0x6   :  { %19 = vsyncpa [#allocation7 + $0x1], 0  ;;  %s2785_s26 = smov 0   ;;  %s2787_s27 = smov 0  }
   0x7   :  { %s2789_s28 = smov 0   ;;  %s2791_s29 = smov 0  }
   0x8   :  { %s2793_s30 = smov 0   ;;  %s2795_s8 = smov 0  }
   0x9 LB: > { %s3100_s6 = sadd.s32 4294967295, %s2732_s8   ;;  %p59_p0 = scmp.ne.s32.totalorder %s2716_s27, %s2712_s26  ;;  %s2732_s8 = sphi %s2795_s8, %s25_s8   ;;  %s2728_s30 = sphi %s2793_s30, %s3116_s30   ;;  %s2724_s29 = sphi %s2791_s29, %s3115_s29   ;;  %s2720_s28 = sphi %s2789_s28, %s3114_s28   ;;  %s2716_s27 = sphi %s2787_s27, %s3113_s27   ;;  %s2712_s26 = sphi %s2785_s26, %s3112_s26  }
   0xa   : > { %p2817_p1 = scmp.eq.s32.totalorder %s3100_s6, 0  ;;  %p2005_p2 = scmp.ge.s32.totalorder %s2732_s8, 1 }
   0xb   : > { %p227_p3 = scmp.lt.s32.totalorder %s2732_s8, 3  ;;  %s2734_s12 = smov [#allocation8]  }
   0xc   : > { %p2825_p4 = por %p2817_p1, %p59_p0  ;;  %s242_s13 = sshll.u32 %s2734_s12, 4  ;;  %s243_s13 = int_to_ptr.vmem [resolvable:$true] %s242_s13 }
   0xd   : > { %p2829_p5 = pnand %p2005_p2, %p227_p3  ;;  %s34_s15 = sadd.s32 1, %s2728_s30 }
   0xe   : > { %s2603_s16 = scalar_lea.vmem %s243_s13, 8192  ;;  %p2611_p12 = scmp.lt.s32.totalorder %s243_s13, %s243_s13 }
   0xf   : > { %p2232_p6 = pneg %p2829_p5  ;;  %p2604_p9 = scmp.ne.s32.totalorder %s243_s13, %s2603_s16 }
  0x10   : > { %p2612_p13 = scmp.lt.s32.totalorder %s2603_s16, %s2603_s16 }
  0x11   : > { %p2837_p7 = pnand %p2232_p6, %p2817_p1 }
  0x12   : > { %p2613_p0 = por %p2612_p13, %p2611_p12 }
  0x13   : > { %p2594_p8 = pneg %p2837_p7 }
  0x15   : > { %p2606_p10 = pnand %p2604_p9, %p2594_p8 }
  0x17   : > { %p2607_p11 = pneg %p2606_p10 }
  0x19   : > { %p2614_p2 = pnand %p2613_p0, %p2607_p11 }
  0x1b   : > { %2617 = shalt.err (!%p2614_p2)
}
  0x1c   : > { %s2735_s17 = smov 128   ;;  %s2736_s18 = smov 8  }
  0x1d   : > { %s3107_s3 = sld [smem:[#allocation13_spill]]  ;;  %p35_p3 = scmp.ge.s32.totalorder %s34_s15, 2 }
  0x1e   : > { %s46_s21 = sadd.s32 1, %s2720_s28  ;;  %p53_p6 = scmp.ne.s32.totalorder %s2720_s28, %s2716_s27 }
  0x1f   : > { %p54_p8 = scmp.eq.s32.totalorder %s2732_s8, 0  ;;  %s3118_s15 = smov (%p35_p3, %s34_s15), 0 }
  0x20   : > { %p2244_p10 = scmp.lt.s32.totalorder %s2732_s8, 2  ;;  %s42_s22 = ssub.s32 %s2728_s30, %s3118_s15 }
  0x21   : > { %p55_p9 = por %p54_p8, %p53_p6  ;;  %s265_s23 = sand.u32 1, %s2720_s28  }
  0x22   : > { %p44_p11 = scmp.eq.s32.totalorder %s42_s22, 0  ;;  %s2008_s24 = sshll.u32 %s265_s23, 4 }
  0x23   : > { %2235 = dma.hbm_to_vmem [thread:$0]  (!%p2837_p7), %s3107_s3, 8192, %s243_s13, [#allocation7], %s2735_s17, %s2735_s17, %s2736_s18  }
  0x24   : > { %s2221_s25 = sshll.u32 %s2728_s30, 8  ;;  %s3108_s0 = sld [smem:[#allocation12_spill]] }
  0x25   : > { %s2861_s26 = scalar_select %p44_p11, %s2720_s28, %s46_s21  }
  0x26   : > { %s269_s16 = scalar_lea.vmem [#allocation4], %s2008_s24  ;;  %p2866_p7 = pnand %p2244_p10, %p55_p9 }
  0x27   : > { %s279_s17 = sshll.u32 %s269_s16, 4  ;;  %s2011_s19 = sshll.u32 %s265_s23, 10  ;;  %s280_s17 = int_to_ptr.vmem [resolvable:$true] %s279_s17 }
  0x28   : > { %s266_s20 = scalar_lea.sflag [#allocation5], %s265_s23  ;;  %p2620_p12 = pneg %p2866_p7 }
  0x29   : > { %s2631_s22 = scalar_lea.vmem %s280_s17, 256  ;;  %s2737_s21 = smov [#allocation4]  }
  0x2a   : > { %s277_s13 = scalar_lea.hbm %s3108_s0, %s2221_s25  ;;  %p2632_p13 = scmp.ne.s32.totalorder %s280_s17, %s2631_s22 }
  0x2b   : > { %s2636_s24 = sshll.u32 %s2737_s21, 4  ;;  %s2637_s24 = int_to_ptr.vmem [resolvable:$false] %s2636_s24 }
  0x2c   : > { %p2634_p0 = pnand %p2632_p13, %p2620_p12  ;;  %s2638_s25 = scalar_lea.vmem %s2637_s24, 512 }
  0x2d   : > { %p2639_p3 = scmp.lt.s32.totalorder %s280_s17, %s2637_s24  ;;  %p2640_p6 = scmp.lt.s32.totalorder %s2638_s25, %s2631_s22 }
  0x2e   : > { %p2635_p2 = pneg %p2634_p0 }
  0x2f   : > { %p2641_p8 = por %p2640_p6, %p2639_p3 }
  0x31   : > { %p2642_p9 = pnand %p2641_p8, %p2635_p2 }
  0x33   : > { %2645 = shalt.err (!%p2642_p9)
}
  0x34   : > { %2239 = dma.hbm_to_vmem [thread:$0]  (!%p2866_p7), %s277_s13, 256, %s280_s17, %s266_s20  }
  0x35   : > { %s2223_s23 = sshll.u32 %s2728_s30, 14  ;;  %s290_s12 = scalar_lea.vmem [#allocation6], %s2011_s19 }
  0x36   : > { %s298_s14 = sshll.u32 %s290_s12, 4  ;;  %s286_s16 = sand.u32 1, %s2732_s8   ;;  %s299_s14 = int_to_ptr.vmem [resolvable:$true] %s298_s14 }
  0x37   : > { %s297_s0 = scalar_lea.hbm %s3093_s1, %s2223_s23  ;;  %s287_s24 = scalar_lea.sflag [#allocation7], %s286_s16 }
  0x38   : > { %s2659_s22 = scalar_lea.vmem %s299_s14, 16384  ;;  %s2738_s25 = smov [#allocation6]  }
  0x39   : > { %p2660_p10 = scmp.ne.s32.totalorder %s299_s14, %s2659_s22  ;;  %s2664_s3 = sshll.u32 %s2738_s25, 4  ;;  %s2665_s3 = int_to_ptr.vmem [resolvable:$false] %s2664_s3 }
  0x3a   : > { %s2666_s13 = scalar_lea.vmem %s2665_s3, 32768  ;;  %p2667_p0 = scmp.lt.s32.totalorder %s299_s14, %s2665_s3 }
  0x3b   : > { %p2662_p11 = pnand %p2660_p10, %p2620_p12  ;;  %p2668_p2 = scmp.lt.s32.totalorder %s2666_s13, %s2659_s22 }
  0x3d   : > { %p2663_p13 = pneg %p2662_p11  ;;  %p2669_p3 = por %p2668_p2, %p2667_p0 }
  0x3f   : > { %p2670_p6 = pnand %p2669_p3, %p2663_p13 }
  0x41   : > { %2673 = shalt.err (!%p2670_p6)
}
  0x42   : > { %s2739_s17 = smov 256   ;;  %s2740_s6 = smov 16  }
  0x43   : > { %2242 = dma.hbm_to_vmem [thread:$0]  (!%p2866_p7), %s297_s0, 16384, %s299_s14, %s287_s24, %s2739_s17, %s2739_s17, %s2740_s6  }
  0x44   : > { %310 = sbr.rel (%p2829_p5) target bundleno = 832 (0x340), region = 48  ;;  %s312_s19 = sand.u32 (!%p2829_p5), 1, %s2716_s27  }
  0x45   : > { %s2016_s20 = sshll.u32 (!%p2829_p5), %s312_s19, 4  ;;  %s313_s23 = scalar_lea.sflag (!%p2829_p5), [#allocation5], %s312_s19 }
  0x46   : > { %s2890_s12 = scalar_lea.vmem (!%p2829_p5), [#allocation4], %s2016_s20 }
  0x49   : > { %2699 = dma.done.wait (%p2825_p4), %s313_s23, 256  }
  0x4a   : > { %2701 = vsyncadd (%p2825_p4), %s313_s23, 4294967040  ;;  %s3110_s3 = sadd.s32 4294967295, %s2732_s8   ;;  %s2017_s0 = sshll.u32 %s312_s19, 10 }
  0x4b   : > { %s321_s18 = sand.u32 1, %s3110_s3   ;;  %s2898_s11 = scalar_lea.vmem [#allocation6], %s2017_s0 }
  0x4c   : > { %s322_s14 = scalar_lea.sflag [#allocation7], %s321_s18 }
  0x4d   : > { %2703 = dma.done.wait (%p2825_p4), %s322_s14, 16384  }
  0x4e   : > { %2705 = vsyncadd (%p2825_p4), %s322_s14, 4294950912 }
  0x4f   : > { %2707 = dma.done.wait (%p2817_p1), [#allocation7], 8192  }
  0x50   : > { %2709 = vsyncadd (%p2817_p1), [#allocation7], 4294959104  ;;  %p2019_p5 = scmp.ne.s32.totalorder %s2724_s29, 0 }
  0x52   : > { %373 = sbr.rel (%p2019_p5) target bundleno = 90 (0x5a), region = 64 }
  0x57   : > { %v2741_v1 = vmov 0.0  }
  0x58   : > { %374 = vst [vmem:[#allocation2 + $0x10] sm:$0xff] %v2741_v1  ;;  %375 = vst [vmem:[#allocation2] sm:$0xff] %v2741_v1 }
  0x59   : > { %376 = vst [vmem:[#allocation2 + $0x18] sm:$0xff] %v2741_v1  ;;  %377 = vst [vmem:[#allocation2 + $0x8] sm:$0xff] %v2741_v1 }
  0x5a PF: > { %v2300_v2 = vld [vmem:[%s2898_s11 + $0xe4] ss:$16 sps:$4 sm:$0xff]   ;;  %v2304_v4 = vld [vmem:[%s2898_s11 + $0xe0] ss:$16 sps:$4 sm:$0xff]   ;;  %v383_v50 = vld [vmem:[%s2890_s12 + $0x8] sm:$0xff]  ;;  %p2152_p1 = scmp.ne.s32.totalorder %s2724_s29, 1 }
  0x5b   : > { %v2302_v3 = vld [vmem:[%s2898_s11 + $0x2e4] ss:$16 sps:$4 sm:$0xff]   ;;  %1166 = vmatprep.subr.bf16.mxu0 %v2300_v2  ;;  %v2305_v5 = vld [vmem:[%s2898_s11 + $0x2e0] ss:$16 sps:$4 sm:$0xff]   ;;  %v2023_v53 = vcombine.high %v383_v50, %v383_v50 }
  0x5c   : > { %1207 = vmatprep.subr.bf16.mxu1 %v2302_v3  ;;  %v2306_v6 = vld [vmem:[%s2898_s11 + $0xc4] ss:$16 sps:$4 sm:$0xff]   ;;  %1167 = vmatpush1.bf16.msra.mxu0 %v2304_v4  ;;  %v2310_v8 = vld [vmem:[%s2898_s11 + $0xc0] ss:$16 sps:$4 sm:$0xff]  }
  0x5d   : > { %1208 = vmatpush1.bf16.msra.mxu1 %v2305_v5  ;;  %v2308_v7 = vld [vmem:[%s2898_s11 + $0x2c4] ss:$16 sps:$4 sm:$0xff]   ;;  %1168 = vmatprep.subr.bf16.mxu0 %v2306_v6  ;;  %v2311_v9 = vld [vmem:[%s2898_s11 + $0x2c0] ss:$16 sps:$4 sm:$0xff]   ;;  %v2402_v6 = vld [vmem:[%s2898_s11 + $0xec] ss:$16 sps:$4 sm:$0xff]  }
  0x5e   : > { %1209 = vmatprep.subr.bf16.mxu1 %v2308_v7  ;;  %v2312_v10 = vld [vmem:[%s2898_s11 + $0xa4] ss:$16 sps:$4 sm:$0xff]   ;;  %v2316_v12 = vld [vmem:[%s2898_s11 + $0xa0] ss:$16 sps:$4 sm:$0xff]   ;;  %1239 = vmatprep.mubr.bf16.mxu1 %v2023_v53  ;;  %v2405_v7 = vld [vmem:[%s2898_s11 + $0x2ec] ss:$16 sps:$4 sm:$0xff]  }
  0x5f   : > { %v2314_v11 = vld [vmem:[%s2898_s11 + $0x2a4] ss:$16 sps:$4 sm:$0xff]   ;;  %v2317_v13 = vld [vmem:[%s2898_s11 + $0x2a0] ss:$16 sps:$4 sm:$0xff]  }
  0x60   : > { %1169 = vmatpush1.bf16.msra.mxu0 %v2310_v8  ;;  %v2318_v14 = vld [vmem:[%s2898_s11 + $0x84] ss:$16 sps:$4 sm:$0xff]   ;;  %v2322_v16 = vld [vmem:[%s2898_s11 + $0x80] ss:$16 sps:$4 sm:$0xff]  }
  0x61   : > { %1210 = vmatpush1.bf16.msra.mxu1 %v2311_v9  ;;  %1170 = vmatprep.subr.bf16.mxu0 %v2312_v10  ;;  %v2320_v15 = vld [vmem:[%s2898_s11 + $0x284] ss:$16 sps:$4 sm:$0xff]   ;;  %v2323_v17 = vld [vmem:[%s2898_s11 + $0x280] ss:$16 sps:$4 sm:$0xff]   ;;  %v2982_v9 = vcombine.low %v383_v50, %v383_v50  ;;  %v2400_v10 = vld [vmem:[%s2898_s11 + $0xe8] ss:$16 sps:$4 sm:$0xff]  }
  0x62   : > { %1211 = vmatprep.subr.bf16.mxu1 %v2314_v11  ;;  %v2324_v18 = vld [vmem:[%s2898_s11 + $0x64] ss:$16 sps:$4 sm:$0xff]   ;;  %v2328_v20 = vld [vmem:[%s2898_s11 + $0x60] ss:$16 sps:$4 sm:$0xff]   ;;  %v2403_v11 = vld [vmem:[%s2898_s11 + $0x2e8] ss:$16 sps:$4 sm:$0xff]  }
  0x63   : > { %v2326_v19 = vld [vmem:[%s2898_s11 + $0x264] ss:$16 sps:$4 sm:$0xff]   ;;  %v2329_v21 = vld [vmem:[%s2898_s11 + $0x260] ss:$16 sps:$4 sm:$0xff]   ;;  %v2460_v50 = vld [vmem:[%s2898_s11 + $0x1a8] ss:$16 sps:$4 sm:$0xff]  }
  0x64   : > { %1171 = vmatpush1.bf16.msra.mxu0 %v2316_v12  ;;  %v2330_v22 = vld [vmem:[%s2898_s11 + $0x44] ss:$16 sps:$4 sm:$0xff]   ;;  %v2334_v24 = vld [vmem:[%s2898_s11 + $0x40] ss:$16 sps:$4 sm:$0xff]   ;;  %v2408_v12 = vld [vmem:[%s2898_s11 + $0xcc] ss:$16 sps:$4 sm:$0xff]  }
  0x65   : > { %1212 = vmatpush1.bf16.msra.mxu1 %v2317_v13  ;;  %1172 = vmatprep.subr.bf16.mxu0 %v2318_v14  ;;  %v2332_v23 = vld [vmem:[%s2898_s11 + $0x244] ss:$16 sps:$4 sm:$0xff]   ;;  %v2335_v25 = vld [vmem:[%s2898_s11 + $0x240] ss:$16 sps:$4 sm:$0xff]   ;;  %v2411_v13 = vld [vmem:[%s2898_s11 + $0x2cc] ss:$16 sps:$4 sm:$0xff]  }
  0x66   : > { %1213 = vmatprep.subr.bf16.mxu1 %v2320_v15  ;;  %v2336_v26 = vld [vmem:[%s2898_s11 + $0x24] ss:$16 sps:$4 sm:$0xff]   ;;  %v2340_v28 = vld [vmem:[%s2898_s11 + $0x20] ss:$16 sps:$4 sm:$0xff]   ;;  %v2406_v14 = vld [vmem:[%s2898_s11 + $0xc8] ss:$16 sps:$4 sm:$0xff]  }
  0x67   : > { %v2338_v27 = vld [vmem:[%s2898_s11 + $0x224] ss:$16 sps:$4 sm:$0xff]   ;;  %v2341_v29 = vld [vmem:[%s2898_s11 + $0x220] ss:$16 sps:$4 sm:$0xff]   ;;  %v2409_v15 = vld [vmem:[%s2898_s11 + $0x2c8] ss:$16 sps:$4 sm:$0xff]  }
  0x68   : > { %1173 = vmatpush1.bf16.msra.mxu0 %v2322_v16  ;;  %v2342_v30 = vld [vmem:[%s2898_s11 + $0x4] ss:$16 sps:$4 sm:$0xff]   ;;  %v2346_v32 = vld [vmem:[%s2898_s11] ss:$16 sps:$4 sm:$0xff]   ;;  %v2414_v16 = vld [vmem:[%s2898_s11 + $0xac] ss:$16 sps:$4 sm:$0xff]  }
  0x69   : > { %1214 = vmatpush1.bf16.msra.mxu1 %v2323_v17  ;;  %1174 = vmatprep.subr.bf16.mxu0 %v2324_v18  ;;  %v2344_v31 = vld [vmem:[%s2898_s11 + $0x204] ss:$16 sps:$4 sm:$0xff]   ;;  %v2347_v33 = vld [vmem:[%s2898_s11 + $0x200] ss:$16 sps:$4 sm:$0xff]   ;;  %v2417_v17 = vld [vmem:[%s2898_s11 + $0x2ac] ss:$16 sps:$4 sm:$0xff]  }
  0x6a   : > { %1215 = vmatprep.subr.bf16.mxu1 %v2326_v19  ;;  %v2348_v34 = vld [vmem:[%s2898_s11 + $0x1e4] ss:$16 sps:$4 sm:$0xff]   ;;  %v2352_v36 = vld [vmem:[%s2898_s11 + $0x1e0] ss:$16 sps:$4 sm:$0xff]   ;;  %v2412_v18 = vld [vmem:[%s2898_s11 + $0xa8] ss:$16 sps:$4 sm:$0xff]  }
  0x6b   : > { %v2350_v35 = vld [vmem:[%s2898_s11 + $0x3e4] ss:$16 sps:$4 sm:$0xff]   ;;  %v2353_v37 = vld [vmem:[%s2898_s11 + $0x3e0] ss:$16 sps:$4 sm:$0xff]   ;;  %v2415_v19 = vld [vmem:[%s2898_s11 + $0x2a8] ss:$16 sps:$4 sm:$0xff]  }
  0x6c   : > { %1175 = vmatpush1.bf16.msra.mxu0 %v2328_v20  ;;  %v2354_v38 = vld [vmem:[%s2898_s11 + $0x1c4] ss:$16 sps:$4 sm:$0xff]   ;;  %v2358_v40 = vld [vmem:[%s2898_s11 + $0x1c0] ss:$16 sps:$4 sm:$0xff]   ;;  %v2420_v20 = vld [vmem:[%s2898_s11 + $0x8c] ss:$16 sps:$4 sm:$0xff]  }
  0x6d   : > { %1216 = vmatpush1.bf16.msra.mxu1 %v2329_v21  ;;  %1176 = vmatprep.subr.bf16.mxu0 %v2330_v22  ;;  %v2356_v39 = vld [vmem:[%s2898_s11 + $0x3c4] ss:$16 sps:$4 sm:$0xff]   ;;  %v2359_v41 = vld [vmem:[%s2898_s11 + $0x3c0] ss:$16 sps:$4 sm:$0xff]   ;;  %v2423_v21 = vld [vmem:[%s2898_s11 + $0x28c] ss:$16 sps:$4 sm:$0xff]  }
  0x6e   : > { %1217 = vmatprep.subr.bf16.mxu1 %v2332_v23  ;;  %v2360_v42 = vld [vmem:[%s2898_s11 + $0x1a4] ss:$16 sps:$4 sm:$0xff]   ;;  %v2364_v44 = vld [vmem:[%s2898_s11 + $0x1a0] ss:$16 sps:$4 sm:$0xff]   ;;  %v2418_v22 = vld [vmem:[%s2898_s11 + $0x88] ss:$16 sps:$4 sm:$0xff]  }
  0x6f   : > { %v2362_v43 = vld [vmem:[%s2898_s11 + $0x3a4] ss:$16 sps:$4 sm:$0xff]   ;;  %v2365_v45 = vld [vmem:[%s2898_s11 + $0x3a0] ss:$16 sps:$4 sm:$0xff]   ;;  %v2421_v23 = vld [vmem:[%s2898_s11 + $0x288] ss:$16 sps:$4 sm:$0xff]  }
  0x70   : > { %1177 = vmatpush1.bf16.msra.mxu0 %v2334_v24  ;;  %v2366_v46 = vld [vmem:[%s2898_s11 + $0x184] ss:$16 sps:$4 sm:$0xff]   ;;  %v2370_v51 = vld [vmem:[%s2898_s11 + $0x180] ss:$16 sps:$4 sm:$0xff]   ;;  %v2426_v24 = vld [vmem:[%s2898_s11 + $0x6c] ss:$16 sps:$4 sm:$0xff]  }
  0x71   : > { %1218 = vmatpush1.bf16.msra.mxu1 %v2335_v25  ;;  %1178 = vmatprep.subr.bf16.mxu0 %v2336_v26  ;;  %v2368_v47 = vld [vmem:[%s2898_s11 + $0x384] ss:$16 sps:$4 sm:$0xff]   ;;  %v2371_v52 = vld [vmem:[%s2898_s11 + $0x380] ss:$16 sps:$4 sm:$0xff]   ;;  %v2429_v25 = vld [vmem:[%s2898_s11 + $0x26c] ss:$16 sps:$4 sm:$0xff]  }
  0x72   : > { %1219 = vmatprep.subr.bf16.mxu1 %v2338_v27  ;;  %v382_v48 = vld [vmem:[%s2890_s12] sm:$0xff]  ;;  %v2424_v26 = vld [vmem:[%s2898_s11 + $0x68] ss:$16 sps:$4 sm:$0xff]  }
  0x73   : > { %v2956_v49 = vcombine.high %v382_v48, %v382_v48  ;;  %v2372_v54 = vld [vmem:[%s2898_s11 + $0x164] ss:$16 sps:$4 sm:$0xff]   ;;  %v2376_v56 = vld [vmem:[%s2898_s11 + $0x160] ss:$16 sps:$4 sm:$0xff]   ;;  %v2980_v8 = vcombine.low %v382_v48, %v382_v48  ;;  %v2427_v27 = vld [vmem:[%s2898_s11 + $0x268] ss:$16 sps:$4 sm:$0xff]  }
  0x74   : > { %1179 = vmatpush1.bf16.msra.mxu0 %v2340_v28  ;;  %v2374_v55 = vld [vmem:[%s2898_s11 + $0x364] ss:$16 sps:$4 sm:$0xff]   ;;  %v2377_v57 = vld [vmem:[%s2898_s11 + $0x360] ss:$16 sps:$4 sm:$0xff]   ;;  %v2432_v28 = vld [vmem:[%s2898_s11 + $0x4c] ss:$16 sps:$4 sm:$0xff]  }
  0x75   : > { %1220 = vmatpush1.bf16.msra.mxu1 %v2341_v29  ;;  %1180 = vmatprep.subr.bf16.mxu0 %v2342_v30  ;;  %v2378_v58 = vld [vmem:[%s2898_s11 + $0x144] ss:$16 sps:$4 sm:$0xff]   ;;  %v2382_v60 = vld [vmem:[%s2898_s11 + $0x140] ss:$16 sps:$4 sm:$0xff]   ;;  %v2435_v29 = vld [vmem:[%s2898_s11 + $0x24c] ss:$16 sps:$4 sm:$0xff]  }
  0x76   : > { %1221 = vmatprep.subr.bf16.mxu1 %v2344_v31  ;;  %1198 = vmatprep.mubr.bf16.mxu0 %v2956_v49  ;;  %v2380_v59 = vld [vmem:[%s2898_s11 + $0x344] ss:$16 sps:$4 sm:$0xff]   ;;  %v2383_v61 = vld [vmem:[%s2898_s11 + $0x340] ss:$16 sps:$4 sm:$0xff]   ;;  %v2430_v30 = vld [vmem:[%s2898_s11 + $0x48] ss:$16 sps:$4 sm:$0xff]  }
  0x77   : > { %v2384_v62 = vld [vmem:[%s2898_s11 + $0x124] ss:$16 sps:$4 sm:$0xff]   ;;  %v2388_v0 = vld [vmem:[%s2898_s11 + $0x120] ss:$16 sps:$4 sm:$0xff]   ;;  %v2433_v31 = vld [vmem:[%s2898_s11 + $0x248] ss:$16 sps:$4 sm:$0xff]  }
  0x78   : > { %1181 = vmatpush1.bf16.msra.mxu0 %v2346_v32  ;;  %v2386_v63 = vld [vmem:[%s2898_s11 + $0x324] ss:$16 sps:$4 sm:$0xff]   ;;  %v2389_v1 = vld [vmem:[%s2898_s11 + $0x320] ss:$16 sps:$4 sm:$0xff]   ;;  %v2438_v32 = vld [vmem:[%s2898_s11 + $0x2c] ss:$16 sps:$4 sm:$0xff]  }
  0x79   : > { %1222 = vmatpush1.bf16.msra.mxu1 %v2347_v33  ;;  %1182 = vmatprep.subr.bf16.mxu0 %v2348_v34  ;;  %v2390_v2 = vld [vmem:[%s2898_s11 + $0x104] ss:$16 sps:$4 sm:$0xff]   ;;  %v2394_v4 = vld [vmem:[%s2898_s11 + $0x100] ss:$16 sps:$4 sm:$0xff]   ;;  %v2441_v33 = vld [vmem:[%s2898_s11 + $0x22c] ss:$16 sps:$4 sm:$0xff]  }
  0x7a   : > { %1223 = vmatprep.subr.bf16.mxu1 %v2350_v35  ;;  %v2392_v3 = vld [vmem:[%s2898_s11 + $0x304] ss:$16 sps:$4 sm:$0xff]   ;;  %v2395_v5 = vld [vmem:[%s2898_s11 + $0x300] ss:$16 sps:$4 sm:$0xff]   ;;  %v2436_v34 = vld [vmem:[%s2898_s11 + $0x28] ss:$16 sps:$4 sm:$0xff]  }
  0x7b   : > { %v2439_v35 = vld [vmem:[%s2898_s11 + $0x228] ss:$16 sps:$4 sm:$0xff]   ;;  %v2462_v48 = vld [vmem:[%s2898_s11 + $0x1ac] ss:$16 sps:$4 sm:$0xff]  }
  0x7c   : > { %1183 = vmatpush2.bf16.msra.mxu0 %v2352_v36  ;;  %v2444_v36 = vld [vmem:[%s2898_s11 + $0xc] ss:$16 sps:$4 sm:$0xff]  }
  0x7d   : > { %1224 = vmatpush2.bf16.msra.mxu1 %v2353_v37  ;;  %1184 = vmatprep.subr.bf16.mxu0 %v2354_v38  ;;  %v2447_v37 = vld [vmem:[%s2898_s11 + $0x20c] ss:$16 sps:$4 sm:$0xff]   ;;  %v2442_v38 = vld [vmem:[%s2898_s11 + $0x8] ss:$16 sps:$4 sm:$0xff]  }
  0x7e   : > { %1225 = vmatprep.subr.bf16.mxu1 %v2356_v39  ;;  %v2445_v39 = vld [vmem:[%s2898_s11 + $0x208] ss:$16 sps:$4 sm:$0xff]  }
  0x80   : > { %1185 = vmatpush2.bf16.msra.mxu0 %v2358_v40  ;;  %v2450_v40 = vld [vmem:[%s2898_s11 + $0x1ec] ss:$16 sps:$4 sm:$0xff]  }
  0x81   : > { %1226 = vmatpush2.bf16.msra.mxu1 %v2359_v41  ;;  %1186 = vmatprep.subr.bf16.mxu0 %v2360_v42  ;;  %v2453_v41 = vld [vmem:[%s2898_s11 + $0x3ec] ss:$16 sps:$4 sm:$0xff]   ;;  %v2448_v42 = vld [vmem:[%s2898_s11 + $0x1e8] ss:$16 sps:$4 sm:$0xff]  }
  0x82   : > { %1227 = vmatprep.subr.bf16.mxu1 %v2362_v43  ;;  %v2451_v43 = vld [vmem:[%s2898_s11 + $0x3e8] ss:$16 sps:$4 sm:$0xff]  }
  0x84   : > { %1187 = vmatpush2.bf16.msra.mxu0 %v2364_v44  ;;  %v2456_v44 = vld [vmem:[%s2898_s11 + $0x1cc] ss:$16 sps:$4 sm:$0xff]  }
  0x85   : > { %1228 = vmatpush2.bf16.msra.mxu1 %v2365_v45  ;;  %1188 = vmatprep.subr.bf16.mxu0 %v2366_v46  ;;  %v2459_v45 = vld [vmem:[%s2898_s11 + $0x3cc] ss:$16 sps:$4 sm:$0xff]   ;;  %v2454_v46 = vld [vmem:[%s2898_s11 + $0x1c8] ss:$16 sps:$4 sm:$0xff]  }
  0x86   : > { %1229 = vmatprep.subr.bf16.mxu1 %v2368_v47  ;;  %v2457_v47 = vld [vmem:[%s2898_s11 + $0x3c8] ss:$16 sps:$4 sm:$0xff]  }
  0x88   : > { %1189 = vmatpush2.bf16.msra.mxu0 %v2370_v51  ;;  %v2463_v51 = vld [vmem:[%s2898_s11 + $0x3a8] ss:$16 sps:$4 sm:$0xff]  }
  0x89   : > { %1230 = vmatpush2.bf16.msra.mxu1 %v2371_v52  ;;  %1190 = vmatprep.subr.bf16.mxu0 %v2372_v54  ;;  %v2468_v52 = vld [vmem:[%s2898_s11 + $0x18c] ss:$16 sps:$4 sm:$0xff]   ;;  %v2466_v54 = vld [vmem:[%s2898_s11 + $0x188] ss:$16 sps:$4 sm:$0xff]  }
  0x8a   : > { %1231 = vmatprep.subr.bf16.mxu1 %v2374_v55  ;;  %v2469_v55 = vld [vmem:[%s2898_s11 + $0x388] ss:$16 sps:$4 sm:$0xff]  }
  0x8c   : > { %1191 = vmatpush2.bf16.msra.mxu0 %v2376_v56  ;;  %v2474_v56 = vld [vmem:[%s2898_s11 + $0x16c] ss:$16 sps:$4 sm:$0xff]  }
  0x8d   : > { %1232 = vmatpush2.bf16.msra.mxu1 %v2377_v57  ;;  %1192 = vmatprep.subr.bf16.mxu0 %v2378_v58  ;;  %v2477_v57 = vld [vmem:[%s2898_s11 + $0x36c] ss:$16 sps:$4 sm:$0xff]   ;;  %v2472_v58 = vld [vmem:[%s2898_s11 + $0x168] ss:$16 sps:$4 sm:$0xff]  }
  0x8e   : > { %1233 = vmatprep.subr.bf16.mxu1 %v2380_v59  ;;  %v2475_v59 = vld [vmem:[%s2898_s11 + $0x368] ss:$16 sps:$4 sm:$0xff]  }
  0x90   : > { %1193 = vmatpush2.bf16.msra.mxu0 %v2382_v60  ;;  %v2480_v60 = vld [vmem:[%s2898_s11 + $0x14c] ss:$16 sps:$4 sm:$0xff]  }
  0x91   : > { %1234 = vmatpush2.bf16.msra.mxu1 %v2383_v61  ;;  %1194 = vmatprep.subr.bf16.mxu0 %v2384_v62  ;;  %v2483_v61 = vld [vmem:[%s2898_s11 + $0x34c] ss:$16 sps:$4 sm:$0xff]   ;;  %v2478_v62 = vld [vmem:[%s2898_s11 + $0x148] ss:$16 sps:$4 sm:$0xff]  }
  0x92   : > { %1235 = vmatprep.subr.bf16.mxu1 %v2386_v63  ;;  %v2481_v63 = vld [vmem:[%s2898_s11 + $0x348] ss:$16 sps:$4 sm:$0xff]  }
  0x94   : > { %1195 = vmatpush2.bf16.msra.mxu0 %v2388_v0  ;;  %v2486_v0 = vld [vmem:[%s2898_s11 + $0x12c] ss:$16 sps:$4 sm:$0xff]  }
  0x95   : > { %1236 = vmatpush2.bf16.msra.mxu1 %v2389_v1  ;;  %1196 = vmatprep.subr.bf16.mxu0 %v2390_v2  ;;  %v2489_v1 = vld [vmem:[%s2898_s11 + $0x32c] ss:$16 sps:$4 sm:$0xff]   ;;  %v2484_v2 = vld [vmem:[%s2898_s11 + $0x128] ss:$16 sps:$4 sm:$0xff]  }
  0x96   : > { %1237 = vmatprep.subr.bf16.mxu1 %v2392_v3  ;;  %v2487_v3 = vld [vmem:[%s2898_s11 + $0x328] ss:$16 sps:$4 sm:$0xff]  }
  0x98   : > { %1197 = vmatpush2.bf16.msra.mxu0 %v2394_v4  ;;  %v2492_v4 = vld [vmem:[%s2898_s11 + $0x10c] ss:$16 sps:$4 sm:$0xff]  }
  0x99   : > { %1238 = vmatpush2.bf16.msra.mxu1 %v2395_v5  ;;  %1248 = vmatprep.subr.bf16.mxu0 %v2402_v6  ;;  %v2495_v5 = vld [vmem:[%s2898_s11 + $0x30c] ss:$16 sps:$4 sm:$0xff]   ;;  %v2490_v6 = vld [vmem:[%s2898_s11 + $0x108] ss:$16 sps:$4 sm:$0xff]  }
  0x9a   : > { %1289 = vmatprep.subr.bf16.mxu1 %v2405_v7  ;;  %v2493_v7 = vld [vmem:[%s2898_s11 + $0x308] ss:$16 sps:$4 sm:$0xff]  }
  0x9b   : > { %1199 = vmatmul.mubr.bf16.vlgmr.msra.gmra.mxu0 %v2980_v8 }
  0x9c   : > { %1240 = vmatmul.mubr.bf16.vlgmr.msra.gmra.mxu1 %v2982_v9  ;;  %1249 = vmatpush1.bf16.msra.mxu0 %v2400_v10 }
  0x9d   : > { %1290 = vmatpush1.bf16.msra.mxu1 %v2403_v11  ;;  %1250 = vmatprep.subr.bf16.mxu0 %v2408_v12  ;;  %v378_v11 = vld [vmem:[#allocation2 + $0x10] sm:$0xff] }
  0x9e   : > { %1291 = vmatprep.subr.bf16.mxu1 %v2411_v13  ;;  %1280 = vmatprep.mubr.bf16.mxu0 %v2956_v49  ;;  %v2465_v49 = vld [vmem:[%s2898_s11 + $0x3ac] ss:$16 sps:$4 sm:$0xff]  }
  0x9f   : > { %1321 = vmatprep.mubr.bf16.mxu1 %v2023_v53  ;;  %v2471_v53 = vld [vmem:[%s2898_s11 + $0x38c] ss:$16 sps:$4 sm:$0xff]  }
  0xa0   : > { %1251 = vmatpush1.bf16.msra.mxu0 %v2406_v14 }
  0xa1   : > { %1292 = vmatpush1.bf16.msra.mxu1 %v2409_v15  ;;  %1252 = vmatprep.subr.bf16.mxu0 %v2414_v16  ;;  %v379_v15 = vld [vmem:[#allocation2] sm:$0xff] }
  0xa2   : > { %1293 = vmatprep.subr.bf16.mxu1 %v2417_v17 }
  0xa4   : > { %1253 = vmatpush1.bf16.msra.mxu0 %v2412_v18 }
  0xa5   : > { %1294 = vmatpush1.bf16.msra.mxu1 %v2415_v19  ;;  %1254 = vmatprep.subr.bf16.mxu0 %v2420_v20 }
  0xa6   : > { %1295 = vmatprep.subr.bf16.mxu1 %v2423_v21 }
  0xa8   : > { %1255 = vmatpush1.bf16.msra.mxu0 %v2418_v22 }
  0xa9   : > { %1296 = vmatpush1.bf16.msra.mxu1 %v2421_v23  ;;  %1256 = vmatprep.subr.bf16.mxu0 %v2426_v24 }
  0xaa   : > { %1297 = vmatprep.subr.bf16.mxu1 %v2429_v25 }
  0xac   : > { %1257 = vmatpush1.bf16.msra.mxu0 %v2424_v26 }
  0xad   : > { %1298 = vmatpush1.bf16.msra.mxu1 %v2427_v27  ;;  %1258 = vmatprep.subr.bf16.mxu0 %v2432_v28  ;;  %v381_v27 = vld [vmem:[#allocation2 + $0x8] sm:$0xff] }
  0xae   : > { %1299 = vmatprep.subr.bf16.mxu1 %v2435_v29 }
  0xb0   : > { %1259 = vmatpush1.bf16.msra.mxu0 %v2430_v30 }
  0xb1   : > { %1300 = vmatpush1.bf16.msra.mxu1 %v2433_v31  ;;  %1260 = vmatprep.subr.bf16.mxu0 %v2438_v32 }
  0xb2   : > { %1301 = vmatprep.subr.bf16.mxu1 %v2441_v33 }
  0xb4   : > { %1261 = vmatpush1.bf16.msra.mxu0 %v2436_v34 }
  0xb5   : > { %1302 = vmatpush1.bf16.msra.mxu1 %v2439_v35  ;;  %1262 = vmatprep.subr.bf16.mxu0 %v2444_v36 }
  0xb6   : > { %1303 = vmatprep.subr.bf16.mxu1 %v2447_v37 }
  0xb8   : > { %1263 = vmatpush1.bf16.msra.mxu0 %v2442_v38 }
  0xb9   : > { %1304 = vmatpush1.bf16.msra.mxu1 %v2445_v39  ;;  %1264 = vmatprep.subr.bf16.mxu0 %v2450_v40 }
  0xba   : > { %1305 = vmatprep.subr.bf16.mxu1 %v2453_v41 }
  0xbc   : > { %1265 = vmatpush2.bf16.msra.mxu0 %v2448_v42 }
  0xbd   : > { %1306 = vmatpush2.bf16.msra.mxu1 %v2451_v43  ;;  %1266 = vmatprep.subr.bf16.mxu0 %v2456_v44 }
  0xbe   : > { %1307 = vmatprep.subr.bf16.mxu1 %v2459_v45 }
  0xc0   : > { %1267 = vmatpush2.bf16.msra.mxu0 %v2454_v46 }
  0xc1   : > { %1308 = vmatpush2.bf16.msra.mxu1 %v2457_v47  ;;  %1268 = vmatprep.subr.bf16.mxu0 %v2462_v48 }
  0xc2   : > { %1309 = vmatprep.subr.bf16.mxu1 %v2465_v49 }
  0xc4   : > { %1269 = vmatpush2.bf16.msra.mxu0 %v2460_v50 }
  0xc5   : > { %1310 = vmatpush2.bf16.msra.mxu1 %v2463_v51  ;;  %1270 = vmatprep.subr.bf16.mxu0 %v2468_v52 }
  0xc6   : > { %1311 = vmatprep.subr.bf16.mxu1 %v2471_v53 }
  0xc8   : > { %1271 = vmatpush2.bf16.msra.mxu0 %v2466_v54 }
  0xc9   : > { %1312 = vmatpush2.bf16.msra.mxu1 %v2469_v55  ;;  %1272 = vmatprep.subr.bf16.mxu0 %v2474_v56 }
  0xca   : > { %1313 = vmatprep.subr.bf16.mxu1 %v2477_v57 }
  0xcc   : > { %1273 = vmatpush2.bf16.msra.mxu0 %v2472_v58 }
  0xcd   : > { %1314 = vmatpush2.bf16.msra.mxu1 %v2475_v59  ;;  %1274 = vmatprep.subr.bf16.mxu0 %v2480_v60 }
  0xce   : > { %1315 = vmatprep.subr.bf16.mxu1 %v2483_v61 }
  0xd0   : > { %1275 = vmatpush2.bf16.msra.mxu0 %v2478_v62 }
  0xd1   : > { %1316 = vmatpush2.bf16.msra.mxu1 %v2481_v63  ;;  %1276 = vmatprep.subr.bf16.mxu0 %v2486_v0 }
  0xd2   : > { %1317 = vmatprep.subr.bf16.mxu1 %v2489_v1 }
  0xd4   : > { %1277 = vmatpush2.bf16.msra.mxu0 %v2484_v2 }
  0xd5   : > { %1318 = vmatpush2.bf16.msra.mxu1 %v2487_v3  ;;  %1278 = vmatprep.subr.bf16.mxu0 %v2492_v4 }
  0xd6   : > { %1319 = vmatprep.subr.bf16.mxu1 %v2495_v5 }
  0xd8   : > { %1279 = vmatpush2.bf16.msra.mxu0 %v2490_v6 }
  0xd9   : > { %1320 = vmatpush2.bf16.msra.mxu1 %v2493_v7 }
  0xdb   : > { %1281 = vmatmul.mubr.bf16.vlgmr.msra.gmra.mxu0 %v2980_v8  ;;  %v380_v8 = vld [vmem:[#allocation2 + $0x18] sm:$0xff] }
  0xdc   : > { %1322 = vmatmul.mubr.bf16.vlgmr.msra.gmra.mxu1 %v2982_v9 }
 0x15b   : > { %v1200_v10 = vpop.f32.mrf.mxu0 }
 0x15c   : > { %v1241_v12 = vpop.f32.mrf.mxu1 }
 0x15d   : > { %v1242_v13 = vadd.f32 %v1241_v12, %v1200_v10  ;;  %v1202_v14 = vpop.f32.mrf.mxu0 }
 0x15e   : > { %v1243_v16 = vpop.f32.mrf.mxu1 }
 0x15f   : > { %v1330_v17 = vadd.f32 %v1242_v13, %v378_v11  ;;  %v1244_v18 = vadd.f32 %v1243_v16, %v1202_v14  ;;  %v1204_v19 = vpop.f32.mrf.mxu0 }
 0x160   : > { %v1245_v20 = vpop.f32.mrf.mxu1 }
 0x161   : > { %1334 = vst [vmem:[#allocation2 + $0x10] sm:$0xff] %v1330_v17  ;;  %v1331_v21 = vadd.f32 %v1244_v18, %v379_v15  ;;  %v1205_v22 = vpop.f32.mrf.mxu0 }
 0x162   : > { %v1246_v23 = vpop.f32.mrf.mxu1 }
 0x163   : > { %1335 = vst [vmem:[#allocation2] sm:$0xff] %v1331_v21 }
 0x19b   : > { %v1282_v24 = vpop.f32.mrf.mxu0 }
 0x19c   : > { %v1323_v25 = vpop.f32.mrf.mxu1 }
 0x19d   : > { %v1324_v9 = vadd.f32 %v1323_v25, %v1282_v24  ;;  %v1284_v26 = vpop.f32.mrf.mxu0 }
 0x19e   : > { %v1325_v28 = vpop.f32.mrf.mxu1 }
 0x19f   : > { %v1332_v29 = vadd.f32 %v1324_v9, %v380_v8  ;;  %v1326_v30 = vadd.f32 %v1325_v28, %v1284_v26  ;;  %v1286_v31 = vpop.f32.mrf.mxu0  ;;  %1341 = sbr.rel (%p2152_p1) target bundleno = 832 (0x340), region = 68 }
 0x1a0   : > { %v1327_v32 = vpop.f32.mrf.mxu1 }
 0x1a1   : > { %1336 = vst [vmem:[#allocation2 + $0x18] sm:$0xff] %v1332_v29  ;;  %v1333_v33 = vadd.f32 %v1326_v30, %v381_v27  ;;  %v1287_v34 = vpop.f32.mrf.mxu0 }
 0x1a2   : > { %v1328_v35 = vpop.f32.mrf.mxu1 }
 0x1a3   : > { %1337 = vst [vmem:[#allocation2 + $0x8] sm:$0xff] %v1333_v33 }
 0x1a4   : > { %v2496_v36 = vld [vmem:[#allocation8 + $0x74] ss:$8 sps:$4 sm:$0xff]   ;;  %v2500_v38 = vld [vmem:[#allocation8 + $0x70] ss:$8 sps:$4 sm:$0xff]   ;;  %v2502_v40 = vld [vmem:[#allocation8 + $0x64] ss:$8 sps:$4 sm:$0xff]   ;;  %v1348_v11 = vlaneseq }
 0x1a5   : > { %v2498_v37 = vld [vmem:[#allocation8 + $0x174] ss:$8 sps:$4 sm:$0xff]   ;;  %1784 = vmatprep.subr.bf16.mxu0 %v2496_v36  ;;  %v2501_v39 = vld [vmem:[#allocation8 + $0x170] ss:$8 sps:$4 sm:$0xff]   ;;  %v2504_v41 = vld [vmem:[#allocation8 + $0x164] ss:$8 sps:$4 sm:$0xff]  }
 0x1a6   : > { %1825 = vmatprep.subr.bf16.mxu1 %v2498_v37  ;;  %1785 = vmatpush1.bf16.msra.mxu0 %v2500_v38  ;;  %v2506_v42 = vld [vmem:[#allocation8 + $0x60] ss:$8 sps:$4 sm:$0xff]   ;;  %v2508_v44 = vld [vmem:[#allocation8 + $0x54] ss:$8 sps:$4 sm:$0xff]   ;;  %v2512_v46 = vld [vmem:[#allocation8 + $0x50] ss:$8 sps:$4 sm:$0xff]  }
 0x1a7   : > { %1826 = vmatpush1.bf16.msra.mxu1 %v2501_v39  ;;  %1786 = vmatprep.subr.bf16.mxu0 %v2502_v40  ;;  %v2507_v43 = vld [vmem:[#allocation8 + $0x160] ss:$8 sps:$4 sm:$0xff]   ;;  %v2510_v45 = vld [vmem:[#allocation8 + $0x154] ss:$8 sps:$4 sm:$0xff]   ;;  %v2513_v47 = vld [vmem:[#allocation8 + $0x150] ss:$8 sps:$4 sm:$0xff]  }
 0x1a8   : > { %1827 = vmatprep.subr.bf16.mxu1 %v2504_v41  ;;  %v2514_v48 = vld [vmem:[#allocation8 + $0x44] ss:$8 sps:$4 sm:$0xff]   ;;  %v2518_v50 = vld [vmem:[#allocation8 + $0x40] ss:$8 sps:$4 sm:$0xff]   ;;  %v2520_v52 = vld [vmem:[#allocation8 + $0x34] ss:$8 sps:$4 sm:$0xff]  }
 0x1a9   : > { %v2516_v49 = vld [vmem:[#allocation8 + $0x144] ss:$8 sps:$4 sm:$0xff]   ;;  %v2519_v51 = vld [vmem:[#allocation8 + $0x140] ss:$8 sps:$4 sm:$0xff]   ;;  %v2522_v53 = vld [vmem:[#allocation8 + $0x134] ss:$8 sps:$4 sm:$0xff]  }
 0x1aa   : > { %1787 = vmatpush1.bf16.msra.mxu0 %v2506_v42  ;;  %v2524_v54 = vld [vmem:[#allocation8 + $0x30] ss:$8 sps:$4 sm:$0xff]   ;;  %v2526_v56 = vld [vmem:[#allocation8 + $0x24] ss:$8 sps:$4 sm:$0xff]   ;;  %v2530_v58 = vld [vmem:[#allocation8 + $0x20] ss:$8 sps:$4 sm:$0xff]  }
 0x1ab   : > { %1828 = vmatpush1.bf16.msra.mxu1 %v2507_v43  ;;  %1788 = vmatprep.subr.bf16.mxu0 %v2508_v44  ;;  %v2525_v55 = vld [vmem:[#allocation8 + $0x130] ss:$8 sps:$4 sm:$0xff]   ;;  %v2528_v57 = vld [vmem:[#allocation8 + $0x124] ss:$8 sps:$4 sm:$0xff]   ;;  %v2531_v59 = vld [vmem:[#allocation8 + $0x120] ss:$8 sps:$4 sm:$0xff]  }
 0x1ac   : > { %1829 = vmatprep.subr.bf16.mxu1 %v2510_v45  ;;  %v2532_v60 = vld [vmem:[#allocation8 + $0x14] ss:$8 sps:$4 sm:$0xff]   ;;  %v2536_v62 = vld [vmem:[#allocation8 + $0x10] ss:$8 sps:$4 sm:$0xff]   ;;  %v2538_v0 = vld [vmem:[#allocation8 + $0x4] ss:$8 sps:$4 sm:$0xff]  }
 0x1ad   : > { %v2534_v61 = vld [vmem:[#allocation8 + $0x114] ss:$8 sps:$4 sm:$0xff]   ;;  %v2537_v63 = vld [vmem:[#allocation8 + $0x110] ss:$8 sps:$4 sm:$0xff]   ;;  %v2540_v1 = vld [vmem:[#allocation8 + $0x104] ss:$8 sps:$4 sm:$0xff]  }
 0x1ae   : > { %1789 = vmatpush1.bf16.msra.mxu0 %v2512_v46  ;;  %v2542_v2 = vld [vmem:[#allocation8] ss:$8 sps:$4 sm:$0xff]   ;;  %v2544_v4 = vld [vmem:[#allocation8 + $0xf4] ss:$8 sps:$4 sm:$0xff]   ;;  %v2548_v6 = vld [vmem:[#allocation8 + $0xf0] ss:$8 sps:$4 sm:$0xff]  }
 0x1af   : > { %1830 = vmatpush1.bf16.msra.mxu1 %v2513_v47  ;;  %1790 = vmatprep.subr.bf16.mxu0 %v2514_v48  ;;  %v2543_v3 = vld [vmem:[#allocation8 + $0x100] ss:$8 sps:$4 sm:$0xff]   ;;  %v2546_v5 = vld [vmem:[#allocation8 + $0x1f4] ss:$8 sps:$4 sm:$0xff]   ;;  %v2549_v7 = vld [vmem:[#allocation8 + $0x1f0] ss:$8 sps:$4 sm:$0xff]  }
 0x1b0   : > { %1831 = vmatprep.subr.bf16.mxu1 %v2516_v49  ;;  %v2550_v10 = vld [vmem:[#allocation8 + $0xe4] ss:$8 sps:$4 sm:$0xff]   ;;  %v2554_v13 = vld [vmem:[#allocation8 + $0xe0] ss:$8 sps:$4 sm:$0xff]   ;;  %v2556_v15 = vld [vmem:[#allocation8 + $0xd4] ss:$8 sps:$4 sm:$0xff]  }
 0x1b1   : > { %v2552_v12 = vld [vmem:[#allocation8 + $0x1e4] ss:$8 sps:$4 sm:$0xff]   ;;  %v2555_v14 = vld [vmem:[#allocation8 + $0x1e0] ss:$8 sps:$4 sm:$0xff]   ;;  %v1349_v16 = vshrl.u32 %v1348_v11, 7  ;;  %v1344_v44 = vld [vmem:[#allocation2 + $0x18] sm:$0xff] }
 0x1b2   : > { %1791 = vmatpush1.bf16.msra.mxu0 %v2518_v50  ;;  %v2558_v17 = vld [vmem:[#allocation8 + $0x1d4] ss:$8 sps:$4 sm:$0xff]   ;;  %v2560_v18 = vld [vmem:[#allocation8 + $0xd0] ss:$8 sps:$4 sm:$0xff]   ;;  %v2562_v20 = vld [vmem:[#allocation8 + $0xc4] ss:$8 sps:$4 sm:$0xff]  }
 0x1b3   : > { %1832 = vmatpush1.bf16.msra.mxu1 %v2519_v51  ;;  %1792 = vmatprep.subr.bf16.mxu0 %v2520_v52  ;;  %v2561_v19 = vld [vmem:[#allocation8 + $0x1d0] ss:$8 sps:$4 sm:$0xff]   ;;  %v3052_v21 = vsub.s32 1, %v1349_v16  ;;  %v1362_v22 = vsub.s32 3, %v1349_v16  ;;  %v2564_v23 = vld [vmem:[#allocation8 + $0x1c4] ss:$8 sps:$4 sm:$0xff]  }
 0x1b4   : > { %1833 = vmatprep.subr.bf16.mxu1 %v2522_v53  ;;  %v1343_v24 = vld [vmem:[#allocation2] sm:$0xff]  ;;  %v1345_v25 = vld [vmem:[#allocation2 + $0x8] sm:$0xff]  ;;  %v3057_v9 = vsub.s32 0, %v1349_v16  ;;  %v1358_v26 = vsub.s32 2, %v1349_v16  ;;  %v2572_v35 = vld [vmem:[#allocation8 + $0xb0] ss:$8 sps:$4 sm:$0xff]  }
 0x1b5   : > { %v1346_v8 = vld [vmem:[%s3094_s2] sm:$0xf]  ;;  %v2573_v36 = vld [vmem:[#allocation8 + $0x1b0] ss:$8 sps:$4 sm:$0xff]   ;;  %v2574_v37 = vld [vmem:[#allocation8 + $0xa4] ss:$8 sps:$4 sm:$0xff]  }
 0x1b6   : > { %1793 = vmatpush1.bf16.msra.mxu0 %v2524_v54  ;;  %v2566_v27 = vld [vmem:[#allocation8 + $0xc0] ss:$8 sps:$4 sm:$0xff]   ;;  %v1355_v29 = vrot.slane %v1346_v8, %v3052_v21  ;;  %v1363_v30 = vrot.slane %v1346_v8, %v1362_v22  ;;  %v2568_v31 = vld [vmem:[#allocation8 + $0xb4] ss:$8 sps:$4 sm:$0xff]   ;;  %v1351_v38 = vrot.slane %v1346_v8, %v3057_v9  ;;  %v1359_v39 = vrot.slane %v1346_v8, %v1358_v26  ;;  %v2576_v42 = vld [vmem:[#allocation8 + $0x1a4] ss:$8 sps:$4 sm:$0xff]  }
 0x1b7   : > { %1834 = vmatpush1.bf16.msra.mxu1 %v2525_v55  ;;  %1794 = vmatprep.subr.bf16.mxu0 %v2526_v56  ;;  %v2567_v28 = vld [vmem:[#allocation8 + $0x1c0] ss:$8 sps:$4 sm:$0xff]   ;;  %v2570_v32 = vld [vmem:[#allocation8 + $0x1b4] ss:$8 sps:$4 sm:$0xff]   ;;  %v2584_v55 = vld [vmem:[#allocation8 + $0x90] ss:$8 sps:$4 sm:$0xff]  }
 0x1b8   : > { %1835 = vmatprep.subr.bf16.mxu1 %v2528_v57  ;;  %v1369_v33 = vadd.f32 %v1355_v29, %v1343_v24  ;;  %v1371_v34 = vadd.f32 %v1363_v30, %v1345_v25  ;;  %v1342_v43 = vld [vmem:[#allocation2 + $0x10] sm:$0xff]  ;;  %v2578_v49 = vld [vmem:[#allocation8 + $0xa0] ss:$8 sps:$4 sm:$0xff]   ;;  %v1370_v52 = vadd.f32 %v1359_v39, %v1344_v44  ;;  %v2217_v30 = vld [vmem:[#allocation3] ss:$0 sm:$0xff]  ;;  %vm1897_vm6 = vcmask 7168  }
 0x1b9   : > { %v2579_v50 = vld [vmem:[#allocation8 + $0x1a0] ss:$8 sps:$4 sm:$0xff]   ;;  %v1368_v51 = vadd.f32 %v1351_v38, %v1342_v43  ;;  %v2580_v53 = vld [vmem:[#allocation8 + $0x94] ss:$8 sps:$4 sm:$0xff]   ;;  %v2585_v56 = vld [vmem:[#allocation8 + $0x190] ss:$8 sps:$4 sm:$0xff]  }
 0x1ba   : > { %1795 = vmatpush1.bf16.msra.mxu0 %v2530_v58  ;;  %vm1373_vm0 = vcmp.gt.f32.partialorder %v1369_v33, 0.0  ;;  %v1377_v40 = vmul.f32 0.2, %v1369_v33  ;;  %vm1375_vm1 = vcmp.gt.f32.partialorder %v1371_v34, 0.0  ;;  %v1379_v41 = vmul.f32 0.2, %v1371_v34 }
 0x1bb   : > { %1836 = vmatpush1.bf16.msra.mxu1 %v2531_v59  ;;  %1796 = vmatprep.subr.bf16.mxu0 %v2532_v60  ;;  %v2582_v54 = vld [vmem:[#allocation8 + $0x194] ss:$8 sps:$4 sm:$0xff]   ;;  %v1376_v57 = vmul.f32 0.2, %v1368_v51  ;;  %v1378_v58 = vmul.f32 0.2, %v1370_v52 }
 0x1bc   : > { %1837 = vmatprep.subr.bf16.mxu1 %v2534_v61  ;;  %v1381_v45 = vsel %vm1373_vm0, %v1369_v33, %v1377_v40  ;;  %v1383_v46 = vsel %vm1375_vm1, %v1371_v34, %v1379_v41  ;;  %v2586_v59 = vld [vmem:[#allocation8 + $0x84] ss:$8 sps:$4 sm:$0xff]   ;;  %vm1372_vm2 = vcmp.gt.f32.partialorder %v1368_v51, 0.0  ;;  %vm1374_vm3 = vcmp.gt.f32.partialorder %v1370_v52, 0.0  ;;  %v2590_v61 = vld [vmem:[#allocation8 + $0x80] ss:$8 sps:$4 sm:$0xff]  }
 0x1bd   : > { %v1385_v47 = vpack.c.bf16 %v1381_v45, %v1381_v45  ;;  %v1387_v48 = vpack.c.bf16 %v1383_v46, %v1383_v46  ;;  %v2588_v60 = vld [vmem:[#allocation8 + $0x184] ss:$8 sps:$4 sm:$0xff]  }
 0x1be   : > { %1797 = vmatpush1.bf16.msra.mxu0 %v2536_v62  ;;  %v2591_v62 = vld [vmem:[#allocation8 + $0x180] ss:$8 sps:$4 sm:$0xff]  }
 0x1bf   : > { %1838 = vmatpush1.bf16.msra.mxu1 %v2537_v63  ;;  %1798 = vmatprep.subr.bf16.mxu0 %v2538_v0  ;;  %v1380_v63 = vsel %vm1372_vm2, %v1368_v51, %v1376_v57  ;;  %v1382_v0 = vsel %vm1374_vm3, %v1370_v52, %v1378_v58 }
 0x1c0   : > { %1839 = vmatprep.subr.bf16.mxu1 %v2540_v1  ;;  %1816 = vmatprep.mubr.bf16.mxu0 %v1385_v47  ;;  %v1384_v1 = vpack.c.bf16 %v1380_v63, %v1380_v63 }
 0x1c1   : > { %1857 = vmatprep.mubr.bf16.mxu1 %v1387_v48 }
 0x1c2   : > { %1799 = vmatpush1.bf16.msra.mxu0 %v2542_v2  ;;  %v1386_v2 = vpack.c.bf16 %v1382_v0, %v1382_v0 }
 0x1c3   : > { %1840 = vmatpush1.bf16.msra.mxu1 %v2543_v3  ;;  %1800 = vmatprep.subr.bf16.mxu0 %v2544_v4  ;;  %v1452_v3 = vld [vmem:[%s3096_s4] sm:$0x3] }
 0x1c4   : > { %1841 = vmatprep.subr.bf16.mxu1 %v2546_v5  ;;  %v1457_v4 = vrot.slane %v1452_v3, %v3057_v9  ;;  %v1461_v5 = vrot.slane %v1452_v3, %v3052_v21 }
 0x1c6   : > { %1801 = vmatpush2.bf16.msra.mxu0 %v2548_v6 }
 0x1c7   : > { %1842 = vmatpush2.bf16.msra.mxu1 %v2549_v7  ;;  %1802 = vmatprep.subr.bf16.mxu0 %v2550_v10 }
 0x1c8   : > { %1843 = vmatprep.subr.bf16.mxu1 %v2552_v12 }
 0x1ca   : > { %1803 = vmatpush2.bf16.msra.mxu0 %v2554_v13 }
 0x1cb   : > { %1844 = vmatpush2.bf16.msra.mxu1 %v2555_v14  ;;  %1804 = vmatprep.subr.bf16.mxu0 %v2556_v15  ;;  %v1872_v15 = vld [vmem:[%s3097_s5] sm:$0x3] }
 0x1cc   : > { %1845 = vmatprep.subr.bf16.mxu1 %v2558_v17  ;;  %v1881_v24 = vrot.slane %v1872_v15, %v3052_v21 }
 0x1ce   : > { %1805 = vmatpush2.bf16.msra.mxu0 %v2560_v18 }
 0x1cf   : > { %1846 = vmatpush2.bf16.msra.mxu1 %v2561_v19  ;;  %1806 = vmatprep.subr.bf16.mxu0 %v2562_v20 }
 0x1d0   : > { %1847 = vmatprep.subr.bf16.mxu1 %v2564_v23  ;;  %v1877_v23 = vrot.slane %v1872_v15, %v3057_v9 }
 0x1d2   : > { %1807 = vmatpush2.bf16.msra.mxu0 %v2566_v27 }
 0x1d3   : > { %1848 = vmatpush2.bf16.msra.mxu1 %v2567_v28  ;;  %1808 = vmatprep.subr.bf16.mxu0 %v2568_v31 }
 0x1d4   : > { %1849 = vmatprep.subr.bf16.mxu1 %v2570_v32 }
 0x1d6   : > { %1809 = vmatpush2.bf16.msra.mxu0 %v2572_v35 }
 0x1d7   : > { %1850 = vmatpush2.bf16.msra.mxu1 %v2573_v36  ;;  %1810 = vmatprep.subr.bf16.mxu0 %v2574_v37 }
 0x1d8   : > { %1851 = vmatprep.subr.bf16.mxu1 %v2576_v42 }
 0x1da   : > { %1811 = vmatpush2.bf16.msra.mxu0 %v2578_v49 }
 0x1db   : > { %1852 = vmatpush2.bf16.msra.mxu1 %v2579_v50  ;;  %1812 = vmatprep.subr.bf16.mxu0 %v2580_v53 }
 0x1dc   : > { %1853 = vmatprep.subr.bf16.mxu1 %v2582_v54 }
 0x1de   : > { %1813 = vmatpush2.bf16.msra.mxu0 %v2584_v55 }
 0x1df   : > { %1854 = vmatpush2.bf16.msra.mxu1 %v2585_v56  ;;  %1814 = vmatprep.subr.bf16.mxu0 %v2586_v59 }
 0x1e0   : > { %1855 = vmatprep.subr.bf16.mxu1 %v2588_v60 }
 0x1e2   : > { %1815 = vmatpush2.bf16.msra.mxu0 %v2590_v61 }
 0x1e3   : > { %1856 = vmatpush2.bf16.msra.mxu1 %v2591_v62 }
 0x1e5   : > { %1817 = vmatmul.mubr.bf16.vlgmr.msra.gmra.mxu0 %v1384_v1 }
 0x1e6   : > { %1858 = vmatmul.mubr.bf16.vlgmr.msra.gmra.mxu1 %v1386_v2 }
 0x2a5   : > { %v1818_v6 = vpop.f32.mrf.mxu0 }
 0x2a6   : > { %v1859_v7 = vpop.f32.mrf.mxu1  ;;  %v1819_v10 = vadd.f32 %v1818_v6, %v1457_v4 }
 0x2a7   : > { %v1820_v11 = vpop.f32.mrf.mxu0 }
 0x2a8   : > { %v1861_v12 = vpop.f32.mrf.mxu1  ;;  %v1860_v13 = vadd.f32 %v1859_v7, %v1819_v10  ;;  %v1821_v14 = vadd.f32 %v1820_v11, %v1461_v5 }
 0x2a9   : > { %v1822_v16 = vpop.f32.mrf.mxu0 }
 0x2aa   : > { %v1863_v17 = vpop.f32.mrf.mxu1  ;;  %vm1866_vm4 = vcmp.gt.f32.partialorder %v1860_v13, 0.0  ;;  %v1868_v18 = vmul.f32 0.2, %v1860_v13  ;;  %v1862_v19 = vadd.f32 %v1861_v12, %v1821_v14 }
 0x2ab   : > { %v1823_v20 = vpop.f32.mrf.mxu0 }
 0x2ac   : > { %v1864_v22 = vpop.f32.mrf.mxu1  ;;  %vm1867_vm5 = vcmp.gt.f32.partialorder %v1862_v19, 0.0  ;;  %v1869_v8 = vmul.f32 0.2, %v1862_v19  ;;  %v1870_v25 = vsel %vm1866_vm4, %v1860_v13, %v1868_v18 }
 0x2ad   : > { %v1884_v27 = vmul.f32 %v1877_v23, %v1870_v25 }
 0x2ae   : > { %v1871_v26 = vsel %vm1867_vm5, %v1862_v19, %v1869_v8 }
 0x2af   : > { %v1885_v28 = vmul.f32 %v1881_v24, %v1871_v26 }
 0x2b1   : > { %v1886_v29 = vadd.f32 %v1885_v28, %v1884_v27 }
 0x2b3   : > { %1887 = vadd.xlane.f32.xlu0 %v1886_v29 }
 0x33c   : > { %v1888_v31 = vpop.xlane.xlu0 %1887 }
 0x33d   : > { %v1896_v32 = vadd.f32 %v2217_v30, %v1888_v31 }
 0x33f   : > { %1898 = vst.msk [vmem:[%s3099_s7] sm:$0xff] %vm1897_vm6, %v1896_v32 }
 0x340 PF: > { %s25_s8 = sadd.s32 1, %s2732_s8   ;;  %s3111_s13 = smov %s2861_s26 }
 0x341   : > { %p22_p4 = scmp.ge.s32.totalorder %s25_s8, 4   ;;  %s3112_s26 = smov %s2716_s27 }
 0x342   : > { %s3113_s27 = smov %s2720_s28  ;;  %s3114_s28 = smov %s3111_s13 }
 0x343   : > { %s3115_s29 = smov %s2728_s30  ;;  %s3116_s30 = smov %s3118_s15 }
 0x344   :  { %24 = sbr.rel (!%p22_p4) target bundleno = 9 (0x9), region = 113 }
 0x349   :  { %1918 = vsyncpa [#allocation5], 1 }
 0x34a   :  { %1920 = vsyncpa [#allocation5 + $0x1], 1 }
 0x34b   :  { %1921 = vsyncpa [#allocation7], 1 }
 0x34c   :  { %1923 = vsyncpa [#allocation7 + $0x1], 1 }

</bundles_post_ra>
